<compile_context>
chip_gen: v6e
topology: v6e:2x2x1
jax: 0.10.0
libtpu: 0.0.40
codegen_flags: <defaults>
</compile_context>

<pallas_src>
import functools

import jax
import jax.numpy as jnp
from jax import lax
from jax.experimental import pallas as pl
from jax.experimental.pallas import tpu as pltpu


def _round_up(v, m):
    return (v + m - 1) // m * m


def _vmem_cap_bytes():
    """Physical VMEM per core minus headroom for compiler/internal scratch."""
    cap = 128 << 20
    try:
        info = pltpu.get_tpu_info()
        cap = int(getattr(info, "vmem_capacity_bytes", cap))
    except Exception:
        pass
    return max(32 << 20, cap - (12 << 20))   # v7x: ~52 MiB, v5e/v6e: ~116 MiB


def _vmem_limit(estimate_bytes, cap):
    est = int(1.3 * int(estimate_bytes)) + (2 << 20)
    return int(min(cap, max(32 << 20, est)))


def _divisor_tile(hw, max_cols):
    """Largest multiple-of-128 divisor of hw that is <= max_cols (else hw untiled)."""
    if hw <= max_cols:
        return hw
    t = (max_cols // 128) * 128
    while t >= 128:
        if hw % t == 0:
            return t
        t -= 128
    return hw  # TODO(synk): hw with no multiple-of-128 divisor stays untiled in kernel 1.


def _lane_tile(hw, max_cols):
    """Lane-aligned tile for the cdiv-gridded out-projection kernel."""
    if hw <= max_cols:
        return hw
    return max(128, (max_cols // 128) * 128)


# --------------------------------------------------------------------------------
# Kernel 1: fused qkv projection + channel attention, hw tiled ("arbitrary" axis).
# Emits y^T per batch so the PyTorch transpose(1,2).view glue is a free reshape.
# --------------------------------------------------------------------------------
def _attn_kernel(x_ref, wqkv_ref, bqkv_ref, yt_ref, v_stash, logits_acc, *,
                 c, cp, t1, kt, scale_sq, compute_dtype):
    k_idx = pl.program_id(1)

    @pl.when(k_idx == 0)
    def _():
        logits_acc[...] = jnp.zeros_like(logits_acc)

    x_t = x_ref[0].astype(compute_dtype)                         # [c, t1]
    w_qkv = wqkv_ref[...].astype(compute_dtype)                  # [3cp, c]

    # One fused projection matmul (fp32 accumulation), bias broadcast-added once.
    qkv = jnp.dot(w_qkv, x_t, preferred_element_type=jnp.float32) + bqkv_ref[...]
    q = qkv[0:c].astype(compute_dtype)                           # 8-aligned row groups
    k = qkv[cp:cp + c].astype(compute_dtype)
    v = qkv[2 * cp:2 * cp + c].astype(compute_dtype)

    # Accumulate logits = q @ k^T over hw tiles (fp32 accumulator in VMEM scratch).
    logits_acc[...] += lax.dot_general(q, k, (((1,), (1,)), ((), ())),
                                       preferred_element_type=jnp.float32)

    # Stash this v tile for the finalize phase.
    if kt == 1:
        v_stash[0] = v
    else:
        v_stash[k_idx] = v

    @pl.when(k_idx == kt - 1)
    def _():
        # (hw**-0.25)**2 folded once into the tiny [c,c] logits.
        logits = logits_acc[...] * scale_sq
        m = jnp.max(logits, axis=-1, keepdims=True)
        e = jnp.exp(logits - m)
        denom = jnp.sum(e, axis=-1, keepdims=True)
        inv = pl.reciprocal(denom, approx=True)                  # EUP slot
        inv = inv * (2.0 - denom * inv)                          # one Newton step -> fp32 accuracy
        att = (e * inv).astype(compute_dtype)                    # [c, c]

        if kt == 1:
            y = jnp.dot(att, v_stash[0], preferred_element_type=jnp.float32)
            yt_ref[0] = jnp.transpose(y).astype(yt_ref.dtype)    # [hw, c]
        else:
            # Per-tile y = att @ v_tile and small XLU transposes, live ranges bounded
            # by the fori_loop.
            def tile_body(j, carry):
                yj = jnp.dot(att, v_stash[j], preferred_element_type=jnp.float32)
                start = pl.multiple_of(j * t1, t1)
                yt_ref[0, pl.ds(start, t1), :] = jnp.transpose(yj).astype(yt_ref.dtype)
                return carry
            lax.fori_loop(0, kt, tile_body, 0)


# --------------------------------------------------------------------------------
# Kernel 2: out_proj 1x1 conv + residual (dropout p=0 and norm=Identity are no-ops),
# hw-tiled, lane-dense loads/stores, both grid axes parallel.
# --------------------------------------------------------------------------------
def _out_proj_kernel(x_ref, y2_ref, wo_ref, bo_ref, o_ref, *, compute_dtype):
    y2 = y2_ref[0].astype(compute_dtype)                         # [c, t2]
    wo = wo_ref[...].astype(compute_dtype)                       # [c, c]
    z = jnp.dot(wo, y2, preferred_element_type=jnp.float32) + bo_ref[...]
    o_ref[0] = (x_ref[0].astype(jnp.float32) + z).astype(o_ref.dtype)


def prepare_params(params):
    """One-time fusion/padding of the q/k/v/out projection weights (outside jit)."""
    c = params["wq"].shape[0]
    cp = _round_up(c, 8)
    dt = params["wq"].dtype
    w_qkv = jnp.zeros((3 * cp, c), dt)
    w_qkv = w_qkv.at[0:c].set(params["wq"])
    w_qkv = w_qkv.at[cp:cp + c].set(params["wk"])
    w_qkv = w_qkv.at[2 * cp:2 * cp + c].set(params["wv"])
    b_qkv = jnp.zeros((3 * cp, 1), jnp.float32)
    b_qkv = b_qkv.at[0:c].set(params["bq"].astype(jnp.float32))
    b_qkv = b_qkv.at[cp:cp + c].set(params["bk"].astype(jnp.float32))
    b_qkv = b_qkv.at[2 * cp:2 * cp + c].set(params["bv"].astype(jnp.float32))
    return {"w_qkv": w_qkv, "b_qkv": b_qkv,
            "wo": params["wo"], "bo": params["bo"].astype(jnp.float32)}


def self_attention_2d(x, params, *, compute_dtype=jnp.float32):
    """Forward pass of SelfAttention2d (NCHW in / NCHW out)."""
    if "w_qkv" not in params:        # fall back to fusing in-line if given raw params
        params = prepare_params(params)

    n, c, h, w = x.shape
    hw = h * w
    cp = _round_up(c, 8)
    scale_sq = float(hw) ** (-0.5)   # (hw**-0.25)**2
    dt = x.dtype
    itemsize = jnp.dtype(dt).itemsize
    cdt_size = jnp.dtype(compute_dtype).itemsize
    cap = _vmem_cap_bytes()

    xf = x.reshape(n, c, hw)         # free row-major regroup

    # ---- Kernel 1: fused qkv projection + channel attention --------------------
    per_col1 = 2 * c * itemsize + 3 * cp * 4 + 4 * c * cdt_size
    t1 = _divisor_tile(hw, max(128, (16 << 20) // per_col1))
    kt = hw // t1

    est1 = (2 * c * t1 * itemsize                 # x tiles (double buffered)
            + 2 * hw * c * itemsize               # y^T output block
            + 2 * (3 * cp * (c + 1)) * itemsize   # fused weights + bias
            + kt * c * t1 * cdt_size              # v stash scratch
            + 3 * c * c * 4                       # logits acc / e / att
            + 3 * cp * t1 * (4 + cdt_size)        # qkv + casts
            + 2 * c * t1 * 4)                     # finalize y tile + transpose

    yt = pl.pallas_call(
        functools.partial(_attn_kernel, c=c, cp=cp, t1=t1, kt=kt,
                          scale_sq=scale_sq, compute_dtype=compute_dtype),
        out_shape=jax.ShapeDtypeStruct((n, hw, c), dt),
        grid=(n, kt),
        in_specs=[pl.BlockSpec((1, c, t1), lambda b, k: (b, 0, k)),
                  pl.BlockSpec((3 * cp, c), lambda b, k: (0, 0)),
                  pl.BlockSpec((3 * cp, 1), lambda b, k: (0, 0))],
        out_specs=pl.BlockSpec((1, hw, c), lambda b, k: (b, 0, 0)),
        scratch_shapes=[pltpu.VMEM((kt, c, t1), compute_dtype),   # v stash
                        pltpu.VMEM((c, c), jnp.float32)],         # logits accumulator
        compiler_params=pltpu.CompilerParams(
            dimension_semantics=("parallel", "arbitrary"),
            vmem_limit_bytes=_vmem_limit(est1, cap)),
    )(xf, params["w_qkv"], params["b_qkv"])

    # PyTorch: y.transpose(1,2).contiguous().view(n, c, h, w).
    # Kernel 1 already wrote y^T contiguously, so this is a zero-copy reshape.
    y2 = yt.reshape(n, c, hw)

    # ---- Kernel 2: out_proj + residual ------------------------------------------
    t2 = _lane_tile(hw, min(2048, max(128, (24 << 20) // (8 * c * itemsize))))
    jt = pl.cdiv(hw, t2)
    est2 = (3 * 2 * c * t2 * itemsize             # x / y2 / out tiles (double buffered)
            + 2 * c * (c + 1) * itemsize          # wo + bo
            + 2 * c * t2 * 4)                     # fp32 intermediates

    out = pl.pallas_call(
        functools.partial(_out_proj_kernel, compute_dtype=compute_dtype),
        out_shape=jax.ShapeDtypeStruct((n, c, hw), dt),
        grid=(n, jt),
        in_specs=[pl.BlockSpec((1, c, t2), lambda b, j: (b, 0, j)),
                  pl.BlockSpec((1, c, t2), lambda b, j: (b, 0, j)),
                  pl.BlockSpec((c, c), lambda b, j: (0, 0)),
                  pl.BlockSpec((c, 1), lambda b, j: (0, 0))],
        out_specs=pl.BlockSpec((1, c, t2), lambda b, j: (b, 0, j)),
        compiler_params=pltpu.CompilerParams(
            dimension_semantics=("parallel", "parallel"),
            vmem_limit_bytes=_vmem_limit(est2, cap)),
    )(xf, y2, params["wo"], params["bo"])

    return out.reshape(n, c, h, w)


# --------------------------------------------------------------------------------
# Pure-JAX reference (verification only) and parameter init.
# --------------------------------------------------------------------------------
def _reference(x, params):
    n, c, h, w = x.shape
    hw = h * w
    xf = x.reshape(n, c, hw)

    def proj(wm, bm):
        return jnp.einsum("oc,ncs->nos", wm, xf) + bm[None]

    q = proj(params["wq"], params["bq"])
    k = proj(params["wk"], params["bk"])
    v = proj(params["wv"], params["bv"])
    scale = hw ** (-0.25)
    att = jnp.einsum("ncs,nds->ncd", q * scale, k * scale)
    att = jax.nn.softmax(att, axis=2)
    y = jnp.einsum("ncd,nds->ncs", att, v)
    y2 = jnp.transpose(y, (0, 2, 1)).reshape(n, c, hw)
    z = jnp.einsum("oc,ncs->nos", params["wo"], y2) + params["bo"][None]
    return x + z.reshape(n, c, h, w)


def _init_params(key, c):
    # Conv2d(c, c, 1) weight [c, c, 1, 1] kept as its [c_out, c_in] matrix; bias [c, 1].
    ks = jax.random.split(key, 8)
    mk = lambda k: (jax.random.normal(k, (c, c), jnp.float32) * 0.1)
    bk = lambda k: (jax.random.normal(k, (c, 1), jnp.float32) * 0.05)
    return {
        "wq": mk(ks[0]), "bq": bk(ks[1]),
        "wk": mk(ks[2]), "bk": bk(ks[3]),
        "wv": mk(ks[4]), "bv": bk(ks[5]),
        "wo": mk(ks[6]), "bo": bk(ks[7]),
    }


if __name__ == "__main__":
    key = jax.random.PRNGKey(0)
    k_x, k_p = jax.random.split(key)

    n, c, h, w = 2, 4, 16, 16          # c_in=4, n_head=1 (n_head unused in forward)
    x = jax.random.normal(k_x, (n, c, h, w), jnp.float32)
    params = _init_params(k_p, c)
    fused = prepare_params(params)     # one-time weight fusion, outside the jit step path

    fwd = jax.jit(self_attention_2d)
    out = jax.block_until_ready(fwd(x, fused))

    ref = _reference(x, params)
    if not jnp.allclose(out, ref, atol=2e-4, rtol=2e-4):
        raise AssertionError("Pallas output does not match reference")

    print("KERNEL_OK")
</pallas_src>

<mosaic_0001>
module attributes {stable_mosaic.version = 11 : i64} {
  func.func @_out_proj_kernel(%arg0: i32, %arg1: i32, %arg2: memref<1x4x256xf32, #tpu.memory_space<vmem>>, %arg3: memref<1x4x256xf32, #tpu.memory_space<vmem>>, %arg4: memref<4x4xf32, #tpu.memory_space<vmem>>, %arg5: memref<4x1xf32, #tpu.memory_space<vmem>>, %arg6: memref<1x4x256xf32, #tpu.memory_space<vmem>>) attributes {dimension_semantics = [#tpu.dimension_semantics<parallel>, #tpu.dimension_semantics<parallel>], iteration_bounds = array<i64: 2, 1>, scalar_prefetch = 0 : i64, scratch_operands = 0 : i64, tpu.core_type = #tpu.core_type<tc>, window_params = [{transform_indices = @transform_0, window_bounds = array<i64: 1, 4, 256>}, {transform_indices = @transform_1, window_bounds = array<i64: 1, 4, 256>}, {pipeline_mode = #tpu.pipeline_mode<synchronous>, transform_indices = @transform_2, window_bounds = array<i64: 4, 4>}, {pipeline_mode = #tpu.pipeline_mode<synchronous>, transform_indices = @transform_3, window_bounds = array<i64: 4, 1>}, {transform_indices = @transform_4, window_bounds = array<i64: 1, 4, 256>}]} {
    %c0 = arith.constant 0 : index
    %c0_0 = arith.constant 0 : index
    %c0_1 = arith.constant 0 : index
    %0 = vector.load %arg3[%c0, %c0_0, %c0_1] : memref<1x4x256xf32, #tpu.memory_space<vmem>>, vector<1x4x256xf32>
    %1 = vector.shape_cast %0 : vector<1x4x256xf32> to vector<4x256xf32>
    %c0_2 = arith.constant 0 : index
    %c0_3 = arith.constant 0 : index
    %2 = vector.load %arg4[%c0_2, %c0_3] : memref<4x4xf32, #tpu.memory_space<vmem>>, vector<4x4xf32>
    %cst = arith.constant dense<0.000000e+00> : vector<4x256xf32>
    %3 = tpu.matmul %2, %1, %cst {dimension_numbers = #tpu.dot_dimension_numbers<[1], [0], [0], [1], [0, 0, 1, 1], [], []>} : vector<4x4xf32>, vector<4x256xf32>, vector<4x256xf32> -> vector<4x256xf32>
    %c0_4 = arith.constant 0 : index
    %c0_5 = arith.constant 0 : index
    %4 = vector.load %arg5[%c0_4, %c0_5] : memref<4x1xf32, #tpu.memory_space<vmem>>, vector<4x1xf32>
    %5 = vector.broadcast %4 : vector<4x1xf32> to vector<4x256xf32>
    %6 = arith.addf %3, %5 : vector<4x256xf32>
    %c0_6 = arith.constant 0 : index
    %c0_7 = arith.constant 0 : index
    %c0_8 = arith.constant 0 : index
    %7 = vector.load %arg2[%c0_6, %c0_7, %c0_8] : memref<1x4x256xf32, #tpu.memory_space<vmem>>, vector<1x4x256xf32>
    %8 = vector.shape_cast %7 : vector<1x4x256xf32> to vector<4x256xf32>
    %9 = arith.addf %8, %6 : vector<4x256xf32>
    %c0_9 = arith.constant 0 : index
    %c0_10 = arith.constant 0 : index
    %c0_11 = arith.constant 0 : index
    %10 = vector.load %arg6[%c0_9, %c0_10, %c0_11] : memref<1x4x256xf32, #tpu.memory_space<vmem>>, vector<1x4x256xf32>
    %11 = vector.shape_cast %10 : vector<1x4x256xf32> to vector<4x256xf32>
    %12 = vector.shape_cast %9 : vector<4x256xf32> to vector<1x4x256xf32>
    tpu.vector_store %arg6[%c0_9, %c0_10, %c0_11], %12 {strides = array<i32>} : memref<1x4x256xf32, #tpu.memory_space<vmem>>, vector<1x4x256xf32>,
    return
  }
  func.func @transform_0(%arg0: i32, %arg1: i32) -> (i32, i32, i32) {
    %c0_i32 = arith.constant 0 : i32
    %c0_i32_0 = arith.constant 0 : i32
    return %arg0, %c0_i32, %arg1 : i32, i32, i32
  }
  func.func @transform_1(%arg0: i32, %arg1: i32) -> (i32, i32, i32) {
    %c0_i32 = arith.constant 0 : i32
    %c0_i32_0 = arith.constant 0 : i32
    return %arg0, %c0_i32, %arg1 : i32, i32, i32
  }
  func.func @transform_2(%arg0: i32, %arg1: i32) -> (i32, i32) {
    %c0_i32 = arith.constant 0 : i32
    %c0_i32_0 = arith.constant 0 : i32
    %c0_i32_1 = arith.constant 0 : i32
    return %c0_i32, %c0_i32_0 : i32, i32
  }
  func.func @transform_3(%arg0: i32, %arg1: i32) -> (i32, i32) {
    %c0_i32 = arith.constant 0 : i32
    %c0_i32_0 = arith.constant 0 : i32
    %c0_i32_1 = arith.constant 0 : i32
    return %c0_i32, %c0_i32_0 : i32, i32
  }
  func.func @transform_4(%arg0: i32, %arg1: i32) -> (i32, i32, i32) {
    %c0_i32 = arith.constant 0 : i32
    %c0_i32_0 = arith.constant 0 : i32
    return %arg0, %c0_i32, %arg1 : i32, i32, i32
  }
}

module attributes {stable_mosaic.version = 11 : i64} {
  func.func @_attn_kernel(%arg0: i32, %arg1: i32, %arg2: memref<1x4x256xf32, #tpu.memory_space<vmem>>, %arg3: memref<24x4xf32, #tpu.memory_space<vmem>>, %arg4: memref<24x1xf32, #tpu.memory_space<vmem>>, %arg5: memref<1x256x4xf32, #tpu.memory_space<vmem>>, %arg6: memref<1x4x256xf32, #tpu.memory_space<vmem>>, %arg7: memref<4x4xf32, #tpu.memory_space<vmem>>) attributes {dimension_semantics = [#tpu.dimension_semantics<parallel>, #tpu.dimension_semantics<arbitrary>], iteration_bounds = array<i64: 2, 1>, scalar_prefetch = 0 : i64, scratch_operands = 2 : i64, tpu.core_type = #tpu.core_type<tc>, window_params = [{transform_indices = @transform_0, window_bounds = array<i64: 1, 4, 256>}, {pipeline_mode = #tpu.pipeline_mode<synchronous>, transform_indices = @transform_1, window_bounds = array<i64: 24, 4>}, {pipeline_mode = #tpu.pipeline_mode<synchronous>, transform_indices = @transform_2, window_bounds = array<i64: 24, 1>}, {transform_indices = @transform_3, window_bounds = array<i64: 1, 256, 4>}]} {
    %c0_i32 = arith.constant 0 : i32
    %0 = arith.cmpi eq, %arg1, %c0_i32 : i32
    %1 = arith.extui %0 : i1 to i32
    %c0_i32_0 = arith.constant 0 : i32
    %2 = arith.cmpi ne, %1, %c0_i32_0 : i32
    scf.if %2 {
      %cst_17 = arith.constant 0.000000e+00 : f32
      %23 = vector.broadcast %cst_17 : f32 to vector<4x4xf32>
      %c0_18 = arith.constant 0 : index
      %c0_19 = arith.constant 0 : index
      %24 = vector.load %arg7[%c0_18, %c0_19] : memref<4x4xf32, #tpu.memory_space<vmem>>, vector<4x4xf32>
      tpu.vector_store %arg7[%c0_18, %c0_19], %23 {strides = array<i32>} : memref<4x4xf32, #tpu.memory_space<vmem>>, vector<4x4xf32>,
    } else {
    }
    %c0 = arith.constant 0 : index
    %c0_1 = arith.constant 0 : index
    %c0_2 = arith.constant 0 : index
    %3 = vector.load %arg2[%c0, %c0_1, %c0_2] : memref<1x4x256xf32, #tpu.memory_space<vmem>>, vector<1x4x256xf32>
    %4 = vector.shape_cast %3 : vector<1x4x256xf32> to vector<4x256xf32>
    %c0_3 = arith.constant 0 : index
    %c0_4 = arith.constant 0 : index
    %5 = vector.load %arg3[%c0_3, %c0_4] : memref<24x4xf32, #tpu.memory_space<vmem>>, vector<24x4xf32>
    %cst = arith.constant dense<0.000000e+00> : vector<24x256xf32>
    %6 = tpu.matmul %5, %4, %cst {dimension_numbers = #tpu.dot_dimension_numbers<[1], [0], [0], [1], [0, 0, 1, 1], [], []>} : vector<24x4xf32>, vector<4x256xf32>, vector<24x256xf32> -> vector<24x256xf32>
    %c0_5 = arith.constant 0 : index
    %c0_6 = arith.constant 0 : index
    %7 = vector.load %arg4[%c0_5, %c0_6] : memref<24x1xf32, #tpu.memory_space<vmem>>, vector<24x1xf32>
    %8 = vector.broadcast %7 : vector<24x1xf32> to vector<24x256xf32>
    %9 = arith.addf %6, %8 : vector<24x256xf32>
    %10 = vector.extract_strided_slice %9 {offsets = [0, 0], sizes = [4, 256], strides = [1, 1]} : vector<24x256xf32> to vector<4x256xf32>
    %11 = vector.extract_strided_slice %9 {offsets = [8, 0], sizes = [4, 256], strides = [1, 1]} : vector<24x256xf32> to vector<4x256xf32>
    %12 = vector.extract_strided_slice %9 {offsets = [16, 0], sizes = [4, 256], strides = [1, 1]} : vector<24x256xf32> to vector<4x256xf32>
    %c0_7 = arith.constant 0 : index
    %c0_8 = arith.constant 0 : index
    %13 = vector.load %arg7[%c0_7, %c0_8] : memref<4x4xf32, #tpu.memory_space<vmem>>, vector<4x4xf32>
    %cst_9 = arith.constant dense<0.000000e+00> : vector<4x4xf32>
    %14 = tpu.matmul %10, %11, %cst_9 {dimension_numbers = #tpu.dot_dimension_numbers<[1], [1], [0], [0], [0, 0, 1, 0], [], []>} : vector<4x256xf32>, vector<4x256xf32>, vector<4x4xf32> -> vector<4x4xf32>
    %15 = arith.addf %13, %14 : vector<4x4xf32>
    %c0_10 = arith.constant 0 : index
    %c0_11 = arith.constant 0 : index
    %16 = vector.load %arg7[%c0_10, %c0_11] : memref<4x4xf32, #tpu.memory_space<vmem>>, vector<4x4xf32>
    tpu.vector_store %arg7[%c0_10, %c0_11], %15 {strides = array<i32>} : memref<4x4xf32, #tpu.memory_space<vmem>>, vector<4x4xf32>,
    %c0_12 = arith.constant 0 : index
    %c0_13 = arith.constant 0 : index
    %c0_14 = arith.constant 0 : index
    %17 = vector.load %arg6[%c0_12, %c0_13, %c0_14] : memref<1x4x256xf32, #tpu.memory_space<vmem>>, vector<1x4x256xf32>
    %18 = vector.shape_cast %17 : vector<1x4x256xf32> to vector<4x256xf32>
    %19 = vector.shape_cast %12 : vector<4x256xf32> to vector<1x4x256xf32>
    tpu.vector_store %arg6[%c0_12, %c0_13, %c0_14], %19 {strides = array<i32>} : memref<1x4x256xf32, #tpu.memory_space<vmem>>, vector<1x4x256xf32>,
    %c0_i32_15 = arith.constant 0 : i32
    %20 = arith.cmpi eq, %arg1, %c0_i32_15 : i32
    %21 = arith.extui %20 : i1 to i32
    %c0_i32_16 = arith.constant 0 : i32
    %22 = arith.cmpi ne, %21, %c0_i32_16 : i32
    scf.if %22 {
      %c0_17 = arith.constant 0 : index
      %c0_18 = arith.constant 0 : index
      %23 = vector.load %arg7[%c0_17, %c0_18] : memref<4x4xf32, #tpu.memory_space<vmem>>, vector<4x4xf32>
      %cst_19 = arith.constant 6.250000e-02 : f32
      %24 = vector.broadcast %cst_19 : f32 to vector<4x4xf32>
      %25 = arith.mulf %23, %24 : vector<4x4xf32>
      %cst_20 = arith.constant dense<0xFF800000> : vector<4xf32>
      %26 = vector.multi_reduction <maximumf>, %25, %cst_20 [1] : vector<4x4xf32> to vector<4xf32>
      %27 = vector.shape_cast %26 : vector<4xf32> to vector<4x1xf32>
      %28 = vector.broadcast %27 : vector<4x1xf32> to vector<4x4xf32>
      %29 = arith.subf %25, %28 : vector<4x4xf32>
      %30 = math.exp %29 : vector<4x4xf32>
      %cst_21 = arith.constant dense<0.000000e+00> : vector<4xf32>
      %31 = vector.multi_reduction <add>, %30, %cst_21 [1] : vector<4x4xf32> to vector<4xf32>
      %32 = vector.shape_cast %31 : vector<4xf32> to vector<4x1xf32>
      %33 = tpu.reciprocal %32 {approx = true} : vector<4x1xf32> -> vector<4x1xf32>
      %34 = arith.mulf %32, %33 : vector<4x1xf32>
      %cst_22 = arith.constant 2.000000e+00 : f32
      %35 = vector.broadcast %cst_22 : f32 to vector<4x1xf32>
      %36 = arith.subf %35, %34 : vector<4x1xf32>
      %37 = arith.mulf %33, %36 : vector<4x1xf32>
      %38 = vector.broadcast %37 : vector<4x1xf32> to vector<4x4xf32>
      %39 = arith.mulf %30, %38 : vector<4x4xf32>
      %c0_23 = arith.constant 0 : index
      %c0_24 = arith.constant 0 : index
      %c0_25 = arith.constant 0 : index
      %40 = vector.load %arg6[%c0_23, %c0_24, %c0_25] : memref<1x4x256xf32, #tpu.memory_space<vmem>>, vector<1x4x256xf32>
      %41 = vector.shape_cast %40 : vector<1x4x256xf32> to vector<4x256xf32>
      %cst_26 = arith.constant dense<0.000000e+00> : vector<4x256xf32>
      %42 = tpu.matmul %39, %41, %cst_26 {dimension_numbers = #tpu.dot_dimension_numbers<[1], [0], [0], [1], [0, 0, 1, 1], [], []>} : vector<4x4xf32>, vector<4x256xf32>, vector<4x256xf32> -> vector<4x256xf32>
      %43 = tpu.transpose %42, [1, 0] : vector<4x256xf32> -> vector<256x4xf32>
      %c0_27 = arith.constant 0 : index
      %c0_28 = arith.constant 0 : index
      %c0_29 = arith.constant 0 : index
      %44 = vector.load %arg5[%c0_27, %c0_28, %c0_29] : memref<1x256x4xf32, #tpu.memory_space<vmem>>, vector<1x256x4xf32>
      %45 = vector.shape_cast %44 : vector<1x256x4xf32> to vector<256x4xf32>
      %46 = vector.shape_cast %43 : vector<256x4xf32> to vector<1x256x4xf32>
      tpu.vector_store %arg5[%c0_27, %c0_28, %c0_29], %46 {strides = array<i32>} : memref<1x256x4xf32, #tpu.memory_space<vmem>>, vector<1x256x4xf32>,
    } else {
    }
    return
  }
  func.func @transform_0(%arg0: i32, %arg1: i32) -> (i32, i32, i32) {
    %c0_i32 = arith.constant 0 : i32
    %c0_i32_0 = arith.constant 0 : i32
    return %arg0, %c0_i32, %arg1 : i32, i32, i32
  }
  func.func @transform_1(%arg0: i32, %arg1: i32) -> (i32, i32) {
    %c0_i32 = arith.constant 0 : i32
    %c0_i32_0 = arith.constant 0 : i32
    %c0_i32_1 = arith.constant 0 : i32
    return %c0_i32, %c0_i32_0 : i32, i32
  }
  func.func @transform_2(%arg0: i32, %arg1: i32) -> (i32, i32) {
    %c0_i32 = arith.constant 0 : i32
    %c0_i32_0 = arith.constant 0 : i32
    %c0_i32_1 = arith.constant 0 : i32
    return %c0_i32, %c0_i32_0 : i32, i32
  }
  func.func @transform_3(%arg0: i32, %arg1: i32) -> (i32, i32, i32) {
    %c0_i32 = arith.constant 0 : i32
    %c0_i32_0 = arith.constant 0 : i32
    %c0_i32_1 = arith.constant 0 : i32
    return %arg0, %c0_i32, %c0_i32_0 : i32, i32, i32
  }
}

</mosaic_0001>

<bundles_post_ra>
// kernel: self_attention_2d.3
= control target key start
LH: loop header
LB: loop body
LE: loop exit
PB: predicated region body
PF: predicated region fallthrough
CT: control target
= control target key end

     0   :  { %s573_s15 = smov 0   ;;  %s575_s16 = smov 0   ;;  %s615_s0 = inlined_call_operand.vmem [shape: f32[2,4,256], index: 0, kind: input, shape index: {}]   ;;  %s616_s1 = inlined_call_operand.vmem [shape: f32[2,4,256], index: 1, kind: input, shape index: {}]   ;;  %s617_s2 = inlined_call_operand.vmem [shape: f32[4,4], index: 2, kind: input, shape index: {}]   ;;  %s618_s3 = inlined_call_operand.vmem [shape: f32[4,1], index: 3, kind: input, shape index: {}]   ;;  %s619_s4 = inlined_call_operand.vmem [shape: f32[2,4,256], index: 4, kind: output, shape index: {}]  }
   0x1   :  { %s577_s17 = smov 0  }
   0x2 LB: > { %s26_s18 = sadd.s32 1, %s540_s16  ;;  %p479_p0 = scmp.ge.s32.totalorder %s544_s17, 1  ;;  %s544_s17 = sphi %s577_s17, %s14_s17   ;;  %s540_s16 = sphi %s575_s16, %s621_s16   ;;  %s536_s15 = sphi %s573_s15, %s620_s15  }
   0x3   : > { %p28_p1 = scmp.ge.s32.totalorder %s26_s18, 2  ;;  %p200_p2 = scmp.lt.s32.totalorder %s544_s17, 3 }
   0x5   : > { %s623_s18 = smov (%p28_p1, %s26_s18), 0  ;;  %p201_p3 = pnand %p479_p0, %p200_p2 }
   0x6   : > { %p244_p4 = scmp.lt.s32.totalorder (!%p201_p3), %s536_s15, 1 }
   0x7   : > { %204 = sbr.rel (%p201_p3) target bundleno = 222 (0xde), region = 36 }
   0xc   : > { %v546_v0 = vmov 0.0   ;;  %v275_v1 = vld [vmem:[%s618_s3] sm:$0xf]  ;;  %s625_s15 = smov (!%p244_p4, %s536_s15), 1  ;;  %v547_v2 = vmov 0   ;;  %vm287_vm0 = vcmask 1043456  }
   0xd   : > { %356 = vmatprep.mubr.f32.mxu0 %v546_v0  ;;  %520 = vset.pattern.permute.xlu0 %v547_v2  ;;  %s491_s21 = sshll.u32 %s625_s15, 3  ;;  %v274_v5 = vld [vmem:[%s617_s2] sm:$0xf]  ;;  %vm283_vm1 = vcmask 31744  }
   0xe   : > { %278 = vperm.xlu0 %520, %v275_v1   ;;  %s261_s24 = scalar_lea.vmem %s616_s1, %s491_s21  ;;  %s251_s29 = scalar_lea.vmem %s615_s0, %s491_s21 }
   0xf   : > { %v273_v3 = vld [vmem:[%s261_s24] sm:$0xff]  ;;  %s271_s6 = scalar_lea.vmem %s619_s4, %s491_s21 }
  0x10   : > { %v282_v4 = vcombine.high %v273_v3, %v273_v3  ;;  %v363_v11 = vld [vmem:[%s251_s29] sm:$0xff] }
  0x12   : > { %486 = vmatprep.subr.msk.mxu0 %vm287_vm0, %v282_v4 }
  0x13   : > { %487 = vmatpush1.msk.msra.mxu0 %vm287_vm0, %v273_v3 }
  0x14   : > { %488 = vmatmul.mubr.msk.f32.vlgmr.msra.gmra.mxu0 %vm283_vm1, %v274_v5 }
  0x89   : > { %v279_v6 = vpop.permute.xlu0 %278 }
  0xd4   : > { %v358_v7 = vpop.f32.mrf.mxu0 }
  0xd5   : > { %v359_v9 = vadd.f32 %v358_v7, %v279_v6 }
  0xd6   : > { %v360_v8 = vpop.f32.mrf.mxu0 }
  0xd7   : > { %v361_v10 = vadd.f32 %v360_v8, %v279_v6 }
  0xd9   : > { %v366_v12 = vcombine.low %v359_v9, %v361_v10 }
  0xdb   : > { %v368_v13 = vadd.f32 %v366_v12, %v363_v11 }
  0xdd   : > { %369 = vst [vmem:[%s271_s6] sm:$0xff] %v368_v13 }
  0xde PF: > { %s14_s17 = sadd.s32 1, %s544_s17   ;;  %s620_s15 = smov %s540_s16 }
  0xdf   : > { %p11_p5 = scmp.ge.s32.totalorder %s14_s17, 4   ;;  %s621_s16 = smov %s623_s18 }
  0xe1   :  { %13 = sbr.rel (!%p11_p5) target bundleno = 2 (0x2), region = 69 }

// kernel: self_attention_2d.2
= control target key start
LH: loop header
LB: loop body
LE: loop exit
PB: predicated region body
PF: predicated region fallthrough
CT: control target
= control target key end

     0   :  { %s771_s12 = smov 0   ;;  %s773_s13 = smov 0   ;;  %s904_s0 = inlined_call_operand.vmem [shape: f32[2,4,256], index: 0, kind: input, shape index: {}]   ;;  %s905_s1 = inlined_call_operand.vmem [shape: f32[24,4], index: 1, kind: input, shape index: {}]   ;;  %s906_s2 = inlined_call_operand.vmem [shape: f32[24,1], index: 2, kind: input, shape index: {}]   ;;  %s907_s3 = inlined_call_operand.vmem [shape: f32[2,256,4], index: 3, kind: output, shape index: {}]  }
   0x1   :  { %s775_s14 = smov 0  }
   0x2 LB: > { %s25_s15 = sadd.s32 1, %s743_s13  ;;  %p675_p0 = scmp.ge.s32.totalorder %s747_s14, 1  ;;  %s747_s14 = sphi %s775_s14, %s13_s14   ;;  %s743_s13 = sphi %s773_s13, %s909_s13   ;;  %s739_s12 = sphi %s771_s12, %s908_s12  }
   0x3   : > { %p27_p1 = scmp.ge.s32.totalorder %s25_s15, 2  ;;  %p156_p2 = scmp.lt.s32.totalorder %s747_s14, 3 }
   0x5   : > { %s911_s15 = smov (%p27_p1, %s25_s15), 0  ;;  %p157_p3 = pnand %p675_p0, %p156_p2 }
   0x6   : > { %p185_p4 = scmp.lt.s32.totalorder (!%p157_p3), %s739_s12, 1 }
   0x7   : > { %160 = sbr.rel (%p157_p3) target bundleno = 1129 (0x469), region = 32 }
   0xc   : > { %v749_v0 = vmov 0.0   ;;  %v210_v1 = vld [vmem:[%s906_s2 + $0x8] sm:$0xff]  ;;  %s913_s12 = smov (!%p185_p4, %s739_s12), 1  ;;  %v750_v2 = vmov 0   ;;  %v209_v3 = vld [vmem:[%s906_s2] sm:$0xff]  ;;  %vm239_vm0 = vcmask 1043456  }
   0xd   : > { %308 = vmatprep.mubr.f32.mxu0 %v749_v0  ;;  %719 = vset.pattern.permute.xlu0 %v750_v2  ;;  %s690_s18 = sshll.u32 %s913_s12, 3  ;;  %v206_v6 = vld [vmem:[%s905_s1] sm:$0xff]  ;;  %vm229_vm1 = vcmask 31744   ;;  %v211_v7 = vld [vmem:[%s906_s2 + $0x10] sm:$0xff]  ;;  %v207_v8 = vld [vmem:[%s905_s1 + $0x8] sm:$0xff]  ;;  %vm203_vm2 = vcmask 27648  }
   0xe   : > { %219 = vperm.xlu0 %719, %v210_v1   ;;  %s192_s23 = scalar_lea.vmem %s904_s0, %s690_s18  ;;  %v208_v9 = vld [vmem:[%s905_s1 + $0x10] sm:$0xff]  ;;  %204 = vst.msk [vmem:[#allocation3] sm:$0xf] %vm203_vm2, %v749_v0  ;;  %s691_s5 = sshll.u32 %s913_s12, 8 }
   0xf   : > { %v205_v4 = vld [vmem:[%s192_s23] sm:$0xff]  ;;  %s829_s8 = scalar_lea.vmem %s907_s3, %s691_s5 }
  0x10   : > { %v228_v5 = vcombine.high %v205_v4, %v205_v4 }
  0x12   : > { %214 = vperm.xlu0 %719, %v209_v3   ;;  %680 = vmatprep.subr.msk.mxu0 %vm239_vm0, %v228_v5 }
  0x13   : > { %681 = vmatpush1.msk.msra.mxu0 %vm239_vm0, %v205_v4 }
  0x14   : > { %682 = vmatmul.mubr.msk.f32.vlgmr.msra.gmra.mxu0 %vm229_vm1, %v206_v6 }
  0x15   : > { %314 = vmatprep.mubr.f32.mxu0 %v749_v0  ;;  %v327_v27 = vld [vmem:[#allocation3] sm:$0xf] }
  0x16   : > { %224 = vperm.xlu0 %719, %v211_v7  }
  0x18   : > { %683 = vmatmul.mubr.msk.f32.gmra.mxu0 %vm229_vm1, %v207_v8 }
  0x19   : > { %320 = vmatprep.mubr.f32.mxu0 %v749_v0 }
  0x1c   : > { %684 = vmatmul.mubr.msk.f32.gmra.mxu0 %vm229_vm1, %v208_v9 }
  0x89   : > { %v220_v10 = vpop.permute.xlu0 %219 }
  0x8d   : > { %v215_v12 = vpop.permute.xlu0 %214 }
  0x91   : > { %v225_v20 = vpop.permute.xlu0 %224 }
  0xd4   : > { %v310_v11 = vpop.f32.mrf.mxu0 }
  0xd5   : > { %v311_v22 = vadd.f32 %v310_v11, %v215_v12 }
  0xd6   : > { %v312_v13 = vpop.f32.mrf.mxu0 }
  0xd7   : > { %v313_v14 = vadd.f32 %v312_v13, %v215_v12 }
  0xd8   : > { %v316_v15 = vpop.f32.mrf.mxu0 }
  0xd9   : > { %392 = vmatprep.mubr.f32.mxu1 %v313_v14  ;;  %v317_v18 = vadd.f32 %v316_v15, %v220_v10 }
  0xda   : > { %v318_v16 = vpop.f32.mrf.mxu0 }
  0xdb   : > { %v319_v17 = vadd.f32 %v318_v16, %v220_v10 }
  0xdc   : > { %v322_v19 = vpop.f32.mrf.mxu0 }
  0xdd   : > { %358 = vmatprep.subr.mxu1 %v319_v17  ;;  %v323_v23 = vadd.f32 %v322_v19, %v225_v20 }
  0xde   : > { %v324_v21 = vpop.f32.mrf.mxu0  ;;  %359 = vmatpush1.xpose.msra.mxu1 %v317_v18 }
  0xdf   : > { %v325_v24 = vadd.f32 %v324_v21, %v225_v20 }
  0xe1   : > { %v403_v25 = vcombine.low %v323_v23, %v325_v24  ;;  %v692_v26 = vcombine.low %v325_v24, %v325_v24  ;;  %393 = vmatmul.mubr.f32.vlgmr.msra.gmra.mxu1 %v311_v22 }
  0xe2   : > { %499 = vmatprep.mubr.f32.mxu1 %v749_v0 }
  0xe3   : > { %685 = vmatprep.subr.msk.mxu1 %vm239_vm0, %v692_v26 }
  0xe4   : > { %686 = vmatpush1.msk.msra.mxu1 %vm239_vm0, %v403_v25 }
 0x1a1   : > { %v394_v28 = vpop.f32.mrf.mxu1 }
 0x1a2   : > { %v398_v29 = vadd.f32 %v394_v28, %v327_v27 }
 0x1a3   : > { %v396_v30 = vpop.f32.mrf.mxu1 }
 0x1a4   : > { %400 = vst.msk [vmem:[#allocation3] sm:$0xf] %vm203_vm2, %v398_v29 }
 0x1ab   : > { %v409_v31 = vld [vmem:[#allocation3] sm:$0xf] }
 0x1ac   : > { %v410_v32 = vmul.f32 0.0625, %v409_v31 }
 0x1ae   : > { %v411_v33 = vsel %vm203_vm2, %v410_v32, -inf }
 0x1af   : > { %412 = vmax.xlane.f32.xlu1 %v411_v33 }
 0x238   : > { %v413_v34 = vpop.xlane.xlu1 %412 }
 0x239   : > { %v414_v35 = vsub.f32 %v410_v32, %v413_v34 }
 0x23b   : > { %v415_v36 = vmul.f32 1.442695, %v414_v35 }
 0x23d   : > { %721 = vpow2.f32 %v415_v36 }
 0x24a   : > { %v722_v37 = vpop.eup %721 }
 0x24b   : > { %v417_v38 = vsel %vm203_vm2, %v722_v37, 0.0 }
 0x24c   : > { %418 = vadd.xlane.f32.xlu1 %v417_v38 }
 0x2d5   : > { %v419_v39 = vpop.xlane.xlu1 %418 }
 0x2d6   : > { %723 = vrcp.f32 %v419_v39 }
 0x2e3   : > { %v724_v40 = vpop.eup %723 }
 0x2e4   : > { %v421_v41 = vmul.f32 %v724_v40, %v419_v39 }
 0x2e6   : > { %v422_v42 = vsub.f32 2.0, %v421_v41 }
 0x2e8   : > { %v423_v43 = vmul.f32 %v724_v40, %v422_v42 }
 0x2ea   : > { %v424_v44 = vmul.f32 %v722_v37, %v423_v43 }
 0x2ec   : > { %687 = vmatmul.mubr.msk.f32.vlgmr.msra.gmra.mxu1 %vm229_vm1, %v424_v44 }
 0x3ac   : > { %v501_v45 = vpop.f32.mrf.mxu1 }
 0x3ad   : > { %506 = vxpose.xlu1.b32.start.end [1/1] (short) %v501_v45, 128 }
 0x3ae   : > { %v503_v46 = vpop.f32.mrf.mxu1 }
 0x3af   : > { %538 = vxpose.xlu0.b32.start.end [1/1] (short) %v503_v46, 128 }
 0x429   : > { %v522_v47 = vpop.trf.xlu1 }
 0x42a   : > { %570 = vst.msk [vmem:[%s829_s8] sm:$0xff] %vm229_vm1, %v522_v47 }
 0x42b   : > { %v554_v48 = vpop.trf.xlu0 }
 0x42c   : > { %586 = vst.msk [vmem:[%s829_s8 + $0x80] sm:$0xff] %vm229_vm1, %v554_v48 }
 0x42d   : > { %v523_v49 = vpop.trf.xlu1 }
 0x42e   : > { %571 = vst.msk [vmem:[%s829_s8 + $0x8] sm:$0xff] %vm229_vm1, %v523_v49 }
 0x42f   : > { %v555_v50 = vpop.trf.xlu0 }
 0x430   : > { %587 = vst.msk [vmem:[%s829_s8 + $0x88] sm:$0xff] %vm229_vm1, %v555_v50 }
 0x431   : > { %v524_v51 = vpop.trf.xlu1 }
 0x432   : > { %572 = vst.msk [vmem:[%s829_s8 + $0x10] sm:$0xff] %vm229_vm1, %v524_v51 }
 0x433   : > { %v556_v52 = vpop.trf.xlu0 }
 0x434   : > { %588 = vst.msk [vmem:[%s829_s8 + $0x90] sm:$0xff] %vm229_vm1, %v556_v52 }
 0x435   : > { %v525_v53 = vpop.trf.xlu1 }
 0x436   : > { %573 = vst.msk [vmem:[%s829_s8 + $0x18] sm:$0xff] %vm229_vm1, %v525_v53 }
 0x437   : > { %v557_v54 = vpop.trf.xlu0 }
 0x438   : > { %589 = vst.msk [vmem:[%s829_s8 + $0x98] sm:$0xff] %vm229_vm1, %v557_v54 }
 0x439   : > { %v526_v55 = vpop.trf.xlu1 }
 0x43a   : > { %574 = vst.msk [vmem:[%s829_s8 + $0x20] sm:$0xff] %vm229_vm1, %v526_v55 }
 0x43b   : > { %v558_v56 = vpop.trf.xlu0 }
 0x43c   : > { %590 = vst.msk [vmem:[%s829_s8 + $0xa0] sm:$0xff] %vm229_vm1, %v558_v56 }
 0x43d   : > { %v527_v57 = vpop.trf.xlu1 }
 0x43e   : > { %575 = vst.msk [vmem:[%s829_s8 + $0x28] sm:$0xff] %vm229_vm1, %v527_v57 }
 0x43f   : > { %v559_v58 = vpop.trf.xlu0 }
 0x440   : > { %591 = vst.msk [vmem:[%s829_s8 + $0xa8] sm:$0xff] %vm229_vm1, %v559_v58 }
 0x441   : > { %v528_v59 = vpop.trf.xlu1 }
 0x442   : > { %576 = vst.msk [vmem:[%s829_s8 + $0x30] sm:$0xff] %vm229_vm1, %v528_v59 }
 0x443   : > { %v560_v60 = vpop.trf.xlu0 }
 0x444   : > { %592 = vst.msk [vmem:[%s829_s8 + $0xb0] sm:$0xff] %vm229_vm1, %v560_v60 }
 0x445   : > { %v529_v61 = vpop.trf.xlu1 }
 0x446   : > { %577 = vst.msk [vmem:[%s829_s8 + $0x38] sm:$0xff] %vm229_vm1, %v529_v61 }
 0x447   : > { %v561_v62 = vpop.trf.xlu0 }
 0x448   : > { %593 = vst.msk [vmem:[%s829_s8 + $0xb8] sm:$0xff] %vm229_vm1, %v561_v62 }
 0x449   : > { %v530_v63 = vpop.trf.xlu1 }
 0x44a   : > { %578 = vst.msk [vmem:[%s829_s8 + $0x40] sm:$0xff] %vm229_vm1, %v530_v63 }
 0x44b   : > { %v562_v0 = vpop.trf.xlu0 }
 0x44c   : > { %594 = vst.msk [vmem:[%s829_s8 + $0xc0] sm:$0xff] %vm229_vm1, %v562_v0 }
 0x44d   : > { %v531_v1 = vpop.trf.xlu1 }
 0x44e   : > { %579 = vst.msk [vmem:[%s829_s8 + $0x48] sm:$0xff] %vm229_vm1, %v531_v1 }
 0x44f   : > { %v563_v2 = vpop.trf.xlu0 }
 0x450   : > { %595 = vst.msk [vmem:[%s829_s8 + $0xc8] sm:$0xff] %vm229_vm1, %v563_v2 }
 0x451   : > { %v532_v3 = vpop.trf.xlu1 }
 0x452   : > { %580 = vst.msk [vmem:[%s829_s8 + $0x50] sm:$0xff] %vm229_vm1, %v532_v3 }
 0x453   : > { %v564_v4 = vpop.trf.xlu0 }
 0x454   : > { %596 = vst.msk [vmem:[%s829_s8 + $0xd0] sm:$0xff] %vm229_vm1, %v564_v4 }
 0x455   : > { %v533_v5 = vpop.trf.xlu1 }
 0x456   : > { %581 = vst.msk [vmem:[%s829_s8 + $0x58] sm:$0xff] %vm229_vm1, %v533_v5 }
 0x457   : > { %v565_v6 = vpop.trf.xlu0 }
 0x458   : > { %597 = vst.msk [vmem:[%s829_s8 + $0xd8] sm:$0xff] %vm229_vm1, %v565_v6 }
 0x459   : > { %v534_v7 = vpop.trf.xlu1 }
 0x45a   : > { %582 = vst.msk [vmem:[%s829_s8 + $0x60] sm:$0xff] %vm229_vm1, %v534_v7 }
 0x45b   : > { %v566_v8 = vpop.trf.xlu0 }
 0x45c   : > { %598 = vst.msk [vmem:[%s829_s8 + $0xe0] sm:$0xff] %vm229_vm1, %v566_v8 }
 0x45d   : > { %v535_v9 = vpop.trf.xlu1 }
 0x45e   : > { %583 = vst.msk [vmem:[%s829_s8 + $0x68] sm:$0xff] %vm229_vm1, %v535_v9 }
 0x45f   : > { %v567_v10 = vpop.trf.xlu0 }
 0x460   : > { %599 = vst.msk [vmem:[%s829_s8 + $0xe8] sm:$0xff] %vm229_vm1, %v567_v10 }
 0x461   : > { %v536_v11 = vpop.trf.xlu1 }
 0x462   : > { %584 = vst.msk [vmem:[%s829_s8 + $0x70] sm:$0xff] %vm229_vm1, %v536_v11 }
 0x463   : > { %v568_v12 = vpop.trf.xlu0 }
 0x464   : > { %600 = vst.msk [vmem:[%s829_s8 + $0xf0] sm:$0xff] %vm229_vm1, %v568_v12 }
 0x465   : > { %v537_v13 = vpop.trf.xlu1 }
 0x466   : > { %585 = vst.msk [vmem:[%s829_s8 + $0x78] sm:$0xff] %vm229_vm1, %v537_v13 }
 0x467   : > { %v569_v14 = vpop.trf.xlu0 }
 0x468   : > { %601 = vst.msk [vmem:[%s829_s8 + $0xf8] sm:$0xff] %vm229_vm1, %v569_v14 }
 0x469 PF: > { %s13_s14 = sadd.s32 1, %s747_s14   ;;  %s908_s12 = smov %s743_s13 }
 0x46a   : > { %p10_p5 = scmp.ge.s32.totalorder %s13_s14, 4   ;;  %s909_s13 = smov %s911_s15 }
 0x46c   :  { %12 = sbr.rel (!%p10_p5) target bundleno = 2 (0x2), region = 70 }

</bundles_post_ra>
